<compile_context>
chip_gen: v7x
topology: tpu7x:2x2x1
jax: 0.10.0
libtpu: 0.0.40
codegen_flags: <defaults>
</compile_context>

<pallas_src>
import jax
import jax.numpy as jnp
from jax.experimental import pallas as pl
from jax.experimental.pallas import tpu as pltpu


def self_attention_kernel(q_ref, v_ref, w1_ref, b1_ref, vw_ref, vb_ref,
                          ctx_ref, score_ref):
    bt, T, F_in = q_ref.shape
    D_v = v_ref.shape[-1]
    H = w1_ref.shape[-1]

    # ---- W1 linear + tanh: all bt batches folded into one MXU matmul ----
    q2 = q_ref[...].reshape(bt * T, F_in)          # layout-trivial (T%8==0 or bt==1)
    h2 = jnp.tanh(
        jnp.dot(q2, w1_ref[...], preferred_element_type=jnp.float32)
        + b1_ref[...]
    )                                              # (bt*T, H)
    h3 = h2.reshape(bt, T, H)                      # (bt, T, H)

    # ---- V linear (H -> 1) + sigmoid, emitted lane-dense as (bt, 1, T) ----
    vw_b = jnp.broadcast_to(vw_ref[...].reshape(1, 1, H), (bt, 1, H))
    logits = jnp.einsum("bqh,bth->bqt", vw_b, h3,
                        preferred_element_type=jnp.float32) + vb_ref[0]
    score = jax.nn.sigmoid(logits)                 # (bt, 1, T)  -- un-normalized

    # ---- normalization folded into one reciprocal; context on the MXU ----
    denom = jnp.sum(score, axis=-1, keepdims=True)                 # (bt, 1, 1)
    ctx_un = jnp.einsum("bqt,btd->bqd", score, v_ref[...],
                        preferred_element_type=jnp.float32)        # (bt, 1, D_v)
    ctx = ctx_un * pl.reciprocal(denom)            # exact 1/x (keeps 1e-5 tolerance)

    ctx_ref[...] = ctx.astype(ctx_ref.dtype)
    score_ref[...] = score.astype(score_ref.dtype)


def self_attention(query, values, w1_t, b1, vw, vb, *, target_rows=256):
    """query: (B, T, F_in), values: (B, T, D_v)
       w1_t: (F_in, H), b1: (1, H), vw: (1, H), vb: (1,)"""
    B, T, F_in = query.shape
    D_v = values.shape[-1]
    H = w1_t.shape[1]

    # Batches per block: pack ~target_rows rows of the (bt*T, F) matmul per
    # grid step, but keep >=2 grid points when B >= 2 (v7x has 2 TensorCores).
    if T % 8 == 0:
        bt = max(1, min(B, target_rows // max(T, 1)))
    else:
        bt = 1  # keep the in-kernel reshape layout-trivial for ragged T
    if B >= 2:
        bt = min(bt, pl.cdiv(B, 2))
    nblk = pl.cdiv(B, bt)
    Bp = nblk * bt
    if Bp != B:
        pad = Bp - B
        query = jnp.pad(query, ((0, pad), (0, 0), (0, 0)))
        values = jnp.pad(values, ((0, pad), (0, 0), (0, 0)))

    out_shapes = (
        jax.ShapeDtypeStruct((Bp, 1, D_v), jnp.float32),  # context (un-squeezed)
        jax.ShapeDtypeStruct((Bp, 1, T), jnp.float32),    # score, lane-dense in T
    )

    grid_spec = pltpu.PrefetchScalarGridSpec(
        num_scalar_prefetch=0,
        grid=(nblk,),
        in_specs=[
            pl.BlockSpec((bt, T, F_in), lambda b: (b, 0, 0)),   # query block
            pl.BlockSpec((bt, T, D_v), lambda b: (b, 0, 0)),    # values block
            pl.BlockSpec((F_in, H), lambda b: (0, 0)),          # W1^T (full)
            pl.BlockSpec((1, H), lambda b: (0, 0)),             # b1 (full)
            pl.BlockSpec((1, H), lambda b: (0, 0)),             # V weight row
            pl.BlockSpec(memory_space=pltpu.MemorySpace.SMEM),  # V bias scalar
        ],
        out_specs=[
            pl.BlockSpec((bt, 1, D_v), lambda b: (b, 0, 0)),
            pl.BlockSpec((bt, 1, T), lambda b: (b, 0, 0)),
        ],
    )

    ctx3, score3 = pl.pallas_call(
        self_attention_kernel,
        out_shape=out_shapes,
        grid_spec=grid_spec,
        compiler_params=pltpu.CompilerParams(
            dimension_semantics=("parallel",)),
    )(query, values, w1_t, b1, vw, vb)

    # Strip batch padding and restore the public (B, D_v) / (B, T, 1) layout.
    ctx = ctx3[:B].reshape(B, D_v)
    score = score3[:B].reshape(B, T, 1)
    return ctx, score


def reference(query, values, w1_t, b1, vw, vb):
    h = jnp.tanh(jnp.einsum("btf,fh->bth", query, w1_t) + b1[None])
    score = jax.nn.sigmoid(jnp.einsum("bth,oh->bto", h, vw) + vb[0])
    attn = score / jnp.sum(score, axis=1, keepdims=True)
    ctx = jnp.sum(attn * values, axis=1)
    return ctx, score


if __name__ == "__main__":
    B, T, F_in, H, D_v = 2, 8, 32, 16, 32

    key = jax.random.PRNGKey(0)
    kq, kv, kw1, kb1, kvw, kvb = jax.random.split(key, 6)

    query = jax.random.normal(kq, (B, T, F_in), dtype=jnp.float32)
    values = jax.random.normal(kv, (B, T, D_v), dtype=jnp.float32)

    # Deterministic parameter init (PyTorch-Linear-style uniform bounds).
    bound1 = 1.0 / (F_in ** 0.5)
    w1_t = jax.random.uniform(kw1, (F_in, H), jnp.float32, -bound1, bound1)
    b1 = jax.random.uniform(kb1, (1, H), jnp.float32, -bound1, bound1)
    bound2 = 1.0 / (H ** 0.5)
    vw = jax.random.uniform(kvw, (1, H), jnp.float32, -bound2, bound2)
    vb = jax.random.uniform(kvb, (1,), jnp.float32, -bound2, bound2)

    ctx, score = self_attention(query, values, w1_t, b1, vw, vb)
    ctx, score = jax.block_until_ready((ctx, score))

    ctx_ref, score_ref = reference(query, values, w1_t, b1, vw, vb)
    assert jnp.allclose(ctx, ctx_ref, atol=1e-5, rtol=1e-5)
    assert jnp.allclose(score, score_ref, atol=1e-5, rtol=1e-5)

    print("KERNEL_OK")
</pallas_src>

<mosaic_0001>
module attributes {stable_mosaic.version = 11 : i64} {
  func.func @self_attention_kernel(%arg0: i32, %arg1: memref<1x8x32xf32, #tpu.memory_space<vmem>>, %arg2: memref<1x8x32xf32, #tpu.memory_space<vmem>>, %arg3: memref<32x16xf32, #tpu.memory_space<vmem>>, %arg4: memref<1x16xf32, #tpu.memory_space<vmem>>, %arg5: memref<1x16xf32, #tpu.memory_space<vmem>>, %arg6: memref<1xf32, #tpu.memory_space<smem>>, %arg7: memref<1x1x32xf32, #tpu.memory_space<vmem>>, %arg8: memref<1x1x8xf32, #tpu.memory_space<vmem>>) attributes {dimension_semantics = [#tpu.dimension_semantics<parallel>], iteration_bounds = array<i64: 2>, scalar_prefetch = 0 : i64, scratch_operands = 0 : i64, tpu.core_type = #tpu.core_type<tc>, window_params = [{transform_indices = @transform_0, window_bounds = array<i64: 1, 8, 32>}, {transform_indices = @transform_1, window_bounds = array<i64: 1, 8, 32>}, {pipeline_mode = #tpu.pipeline_mode<synchronous>, transform_indices = @transform_2, window_bounds = array<i64: 32, 16>}, {pipeline_mode = #tpu.pipeline_mode<synchronous>, transform_indices = @transform_3, window_bounds = array<i64: 1, 16>}, {pipeline_mode = #tpu.pipeline_mode<synchronous>, transform_indices = @transform_4, window_bounds = array<i64: 1, 16>}, {transform_indices = @transform_5, window_bounds = array<i64: 1>}, {transform_indices = @transform_6, window_bounds = array<i64: 1, 1, 32>}, {transform_indices = @transform_7, window_bounds = array<i64: 1, 1, 8>}]} {
    %c0 = arith.constant 0 : index
    %c0_0 = arith.constant 0 : index
    %c0_1 = arith.constant 0 : index
    %0 = vector.load %arg1[%c0, %c0_0, %c0_1] : memref<1x8x32xf32, #tpu.memory_space<vmem>>, vector<1x8x32xf32>
    %1 = vector.shape_cast %0 : vector<1x8x32xf32> to vector<8x32xf32>
    %c0_2 = arith.constant 0 : index
    %c0_3 = arith.constant 0 : index
    %2 = vector.load %arg3[%c0_2, %c0_3] : memref<32x16xf32, #tpu.memory_space<vmem>>, vector<32x16xf32>
    %cst = arith.constant dense<0.000000e+00> : vector<8x16xf32>
    %3 = tpu.matmul %1, %2, %cst {dimension_numbers = #tpu.dot_dimension_numbers<[1], [0], [0], [1], [0, 0, 1, 1], [], []>} : vector<8x32xf32>, vector<32x16xf32>, vector<8x16xf32> -> vector<8x16xf32>
    %c0_4 = arith.constant 0 : index
    %c0_5 = arith.constant 0 : index
    %4 = vector.load %arg4[%c0_4, %c0_5] : memref<1x16xf32, #tpu.memory_space<vmem>>, vector<1x16xf32>
    %5 = vector.broadcast %4 : vector<1x16xf32> to vector<8x16xf32>
    %6 = arith.addf %3, %5 : vector<8x16xf32>
    %7 = math.tanh %6 : vector<8x16xf32>
    %8 = vector.shape_cast %7 : vector<8x16xf32> to vector<1x8x16xf32>
    %c0_6 = arith.constant 0 : index
    %c0_7 = arith.constant 0 : index
    %9 = vector.load %arg5[%c0_6, %c0_7] : memref<1x16xf32, #tpu.memory_space<vmem>>, vector<1x16xf32>
    %10 = vector.shape_cast %9 : vector<1x16xf32> to vector<1x1x16xf32>
    "tpu.trace_start"() <{level = 10 : i32, message = "bqh,bth->bqt"}> : () -> ()
    %cst_8 = arith.constant dense<0.000000e+00> : vector<1x1x8xf32>
    %11 = tpu.matmul %10, %8, %cst_8 {dimension_numbers = #tpu.dot_dimension_numbers<[2], [2], [1], [1], [0, 0, 0, 1, 1, 1], [0], [0]>} : vector<1x1x16xf32>, vector<1x8x16xf32>, vector<1x1x8xf32> -> vector<1x1x8xf32>
    "tpu.trace_stop"() : () -> ()
    %c0_9 = arith.constant 0 : index
    %12 = memref.load %arg6[%c0_9] : memref<1xf32, #tpu.memory_space<smem>>
    %13 = vector.broadcast %12 : f32 to vector<1x1x8xf32>
    %14 = arith.addf %11, %13 : vector<1x1x8xf32>
    %15 = arith.negf %14 : vector<1x1x8xf32>
    %16 = math.exp %15 : vector<1x1x8xf32>
    %cst_10 = arith.constant 1.000000e+00 : f32
    %17 = vector.broadcast %cst_10 : f32 to vector<1x1x8xf32>
    %18 = arith.addf %17, %16 : vector<1x1x8xf32>
    %19 = arith.divf %17, %18 : vector<1x1x8xf32>
    %cst_11 = arith.constant dense<0.000000e+00> : vector<1x1xf32>
    %20 = vector.multi_reduction <add>, %19, %cst_11 [2] : vector<1x1x8xf32> to vector<1x1xf32>
    %21 = vector.shape_cast %20 : vector<1x1xf32> to vector<1x1x1xf32>
    %c0_12 = arith.constant 0 : index
    %c0_13 = arith.constant 0 : index
    %c0_14 = arith.constant 0 : index
    %22 = vector.load %arg2[%c0_12, %c0_13, %c0_14] : memref<1x8x32xf32, #tpu.memory_space<vmem>>, vector<1x8x32xf32>
    "tpu.trace_start"() <{level = 10 : i32, message = "bqt,btd->bqd"}> : () -> ()
    %cst_15 = arith.constant dense<0.000000e+00> : vector<1x1x32xf32>
    %23 = tpu.matmul %19, %22, %cst_15 {dimension_numbers = #tpu.dot_dimension_numbers<[2], [1], [1], [2], [0, 0, 0, 1, 1, 2], [0], [0]>} : vector<1x1x8xf32>, vector<1x8x32xf32>, vector<1x1x32xf32> -> vector<1x1x32xf32>
    "tpu.trace_stop"() : () -> ()
    %24 = tpu.reciprocal %21 : vector<1x1x1xf32> -> vector<1x1x1xf32>
    %25 = vector.broadcast %24 : vector<1x1x1xf32> to vector<1x1x32xf32>
    %26 = arith.mulf %23, %25 : vector<1x1x32xf32>
    %c0_16 = arith.constant 0 : index
    %c0_17 = arith.constant 0 : index
    %c0_18 = arith.constant 0 : index
    %27 = vector.load %arg7[%c0_16, %c0_17, %c0_18] : memref<1x1x32xf32, #tpu.memory_space<vmem>>, vector<1x1x32xf32>
    tpu.vector_store %arg7[%c0_16, %c0_17, %c0_18], %26 {strides = array<i32>} : memref<1x1x32xf32, #tpu.memory_space<vmem>>, vector<1x1x32xf32>,
    %c0_19 = arith.constant 0 : index
    %c0_20 = arith.constant 0 : index
    %c0_21 = arith.constant 0 : index
    %28 = vector.load %arg8[%c0_19, %c0_20, %c0_21] : memref<1x1x8xf32, #tpu.memory_space<vmem>>, vector<1x1x8xf32>
    tpu.vector_store %arg8[%c0_19, %c0_20, %c0_21], %19 {strides = array<i32>} : memref<1x1x8xf32, #tpu.memory_space<vmem>>, vector<1x1x8xf32>,
    return
  }
  func.func @transform_0(%arg0: i32) -> (i32, i32, i32) {
    %c0_i32 = arith.constant 0 : i32
    %c0_i32_0 = arith.constant 0 : i32
    %c0_i32_1 = arith.constant 0 : i32
    return %arg0, %c0_i32, %c0_i32_0 : i32, i32, i32
  }
  func.func @transform_1(%arg0: i32) -> (i32, i32, i32) {
    %c0_i32 = arith.constant 0 : i32
    %c0_i32_0 = arith.constant 0 : i32
    %c0_i32_1 = arith.constant 0 : i32
    return %arg0, %c0_i32, %c0_i32_0 : i32, i32, i32
  }
  func.func @transform_2(%arg0: i32) -> (i32, i32) {
    %c0_i32 = arith.constant 0 : i32
    %c0_i32_0 = arith.constant 0 : i32
    %c0_i32_1 = arith.constant 0 : i32
    return %c0_i32, %c0_i32_0 : i32, i32
  }
  func.func @transform_3(%arg0: i32) -> (i32, i32) {
    %c0_i32 = arith.constant 0 : i32
    %c0_i32_0 = arith.constant 0 : i32
    %c0_i32_1 = arith.constant 0 : i32
    return %c0_i32, %c0_i32_0 : i32, i32
  }
  func.func @transform_4(%arg0: i32) -> (i32, i32) {
    %c0_i32 = arith.constant 0 : i32
    %c0_i32_0 = arith.constant 0 : i32
    %c0_i32_1 = arith.constant 0 : i32
    return %c0_i32, %c0_i32_0 : i32, i32
  }
  func.func @transform_5(%arg0: i32) -> i32 {
    %c0_i32 = arith.constant 0 : i32
    %c0_i32_0 = arith.constant 0 : i32
    return %c0_i32 : i32
  }
  func.func @transform_6(%arg0: i32) -> (i32, i32, i32) {
    %c0_i32 = arith.constant 0 : i32
    %c0_i32_0 = arith.constant 0 : i32
    %c0_i32_1 = arith.constant 0 : i32
    return %arg0, %c0_i32, %c0_i32_0 : i32, i32, i32
  }
  func.func @transform_7(%arg0: i32) -> (i32, i32, i32) {
    %c0_i32 = arith.constant 0 : i32
    %c0_i32_0 = arith.constant 0 : i32
    %c0_i32_1 = arith.constant 0 : i32
    return %arg0, %c0_i32, %c0_i32_0 : i32, i32, i32
  }
}

</mosaic_0001>

<bundles_post_ra>
// kernel: tpu_custom_call.1
= control target key start
LH: loop header
LB: loop body
LE: loop exit
PB: predicated region body
PF: predicated region fallthrough
CT: control target
= control target key end

     0   :  { %s1090_s0 = inlined_call_operand.vmem [shape: f32[2,8,32], index: 0, kind: input, shape index: {}]   ;;  %s1091_s1 = inlined_call_operand.vmem [shape: f32[2,8,32], index: 1, kind: input, shape index: {}]   ;;  %s1092_s2 = inlined_call_operand.vmem [shape: f32[32,16], index: 2, kind: input, shape index: {}]   ;;  %s1093_s3 = inlined_call_operand.vmem [shape: f32[1,16], index: 3, kind: input, shape index: {}]   ;;  %s1094_s4 = inlined_call_operand.vmem [shape: f32[1,16], index: 4, kind: input, shape index: {}]   ;;  %s1095_s5 = inlined_call_operand.<no memory space> [shape: f32[1], index: 5, kind: input, shape index: {}]   ;;  %s1096_s6 = inlined_call_operand.hbm [shape: f32[2,1,32], index: 6, kind: output, shape index: {0}]   ;;  %s1097_s7 = inlined_call_operand.hbm [shape: f32[2,1,8], index: 7, kind: output, shape index: {1}]  }
   0x1   :  { %13 = sst [smem:[#allocation2]] %s1095_s5 }
   0x2   :  { %14 = vsyncpa [#allocation4], 0 }
   0x3   :  { %16 = vsyncpa [#allocation4 + $0x1], 0 }
   0x4   :  { %17 = vsyncpa [#allocation6], 0 }
   0x5   :  { %19 = vsyncpa [#allocation6 + $0x1], 0  ;;  %s934_s26 = smov 0   ;;  %s936_s27 = smov 0  }
   0x6   :  { %s938_s28 = smov 0   ;;  %s940_s29 = smov 0  }
   0x7 LB: > { %s955_s5 = sadd.s32 4294967295, %s884_s29   ;;  %s683_s30 = sadd.s32 4294967294, %s884_s29   ;;  %s884_s29 = sphi %s940_s29, %s1103_s29   ;;  %s880_s28 = sphi %s938_s28, %s1102_s28   ;;  %s876_s27 = sphi %s936_s27, %s1101_s27   ;;  %s872_s26 = sphi %s934_s26, %s1100_s26  }
   0x8   : > { %s959_s8 = sadd.s32 1, %s884_s29   ;;  %s168_s9 = sadd.s32 1, %s880_s28 }
   0x9   : > { %s165_s10 = ssub.s32 %s884_s29, %s959_s8  ;;  %p178_p0 = scmp.ne.s32.totalorder %s880_s28, %s876_s27 }
   0xa   : > { %p166_p1 = scmp.eq.s32.totalorder %s165_s10, 0  ;;  %p179_p2 = scmp.eq.s32.totalorder %s955_s5, 1 }
   0xb   : > { %p184_p3 = scmp.ne.s32.totalorder %s876_s27, %s872_s26  ;;  %p185_p4 = scmp.eq.s32.totalorder %s683_s30, 1 }
   0xc   : > { %s970_s11 = scalar_select %p166_p1, %s880_s28, %s168_s9  }
   0xd   : > { %p972_p5 = por %p179_p2, %p178_p0  ;;  %p976_p6 = por %p185_p4, %p184_p3 }
   0xe   : > { %p686_p7 = scmp.ge.s32.totalorder %s884_s29, 1  ;;  %p255_p8 = scmp.lt.s32.totalorder %s884_s29, 3 }
  0x10   : > { %p256_p9 = pnand %p686_p7, %p255_p8 }
  0x11   : > { %v302_v0 = vld [vmem:[%s1092_s2] sm:$0xff] (!%p256_p9)  ;;  %v303_v1 = vld [vmem:[%s1092_s2 + $0x8] sm:$0xff] (!%p256_p9)  ;;  %v304_v2 = vld [vmem:[%s1092_s2 + $0x10] sm:$0xff] (!%p256_p9)  ;;  %v886_v3 = vmov (!%p256_p9), 0.0|0.0   ;;  %vm887_vm0 = vmmov (!%p256_p9), 0   ;;  %v888_v6 = vmov (!%p256_p9), 0.0  }
  0x12   : > { %259 = sbr.rel (%p256_p9) target bundleno = 726 (0x2d6), region = 44  ;;  %729 = vmatprep.subr.bf16.mxu0 (!%p256_p9), %v886_v3  ;;  %v730_v4 = vpack.c.bf16 (!%p256_p9), %v303_v1, %v302_v0  ;;  %v305_v5 = vld [vmem:[%s1092_s2 + $0x18] sm:$0xff] (!%p256_p9)  ;;  %716 = vmatprep.mubr.msk.f32.mxu0 (!%p256_p9), %vm887_vm0, %v888_v6  ;;  %p293_p10 = scmp.lt.s32.totalorder (!%p256_p9), %s955_s5, 1  ;;  %vm313_vm1 = vcmask (!%p256_p9), 261120   ;;  %v689_v9 = vld [vmem:[%s1093_s3] ss:$0 sm:$0xff] (!%p256_p9) }
  0x13   : > { %719 = vmatprep.subr.mxu1 (!%p256_p9), %v888_v6  ;;  %721 = vmatprep.mubr.msk.f32.mxu1 (!%p256_p9), %vm887_vm0, %v888_v6  ;;  %v733_v7 = vpack.c.bf16 (!%p256_p9), %v305_v5, %v304_v2  ;;  %vm391_vm2 = vcmask (!%p256_p9), 130048   ;;  %v388_v14 = vld [vmem:[%s1094_s4] sm:$0x1] (!%p256_p9)  ;;  %s389_s19 = sld [smem:[#allocation2]] (!%p256_p9)  ;;  %s1012_s20 = sand.u32 (!%p256_p9), 1, %s876_s27   ;;  %vm479_vm3 = vcmask (!%p256_p9), 64512  }
  0x14   : > { %731 = vmatpush3.bf16.msra.mxu0 (!%p256_p9), %v730_v4  ;;  %vm474_vm4 = vcmask (!%p256_p9), 57344   ;;  %s292_s21 = scalar_lea.vmem (!%p256_p9), [#allocation5], %s1012_s20  ;;  %s563_s9 = scalar_lea.sflag (!%p256_p9), [#allocation6], %s1012_s20 }
  0x15   : > { %732 = vmatprep.subr.bf16.mxu0 (!%p256_p9), %v886_v3  ;;  %s889_s14 = smov (!%p256_p9), [#allocation5]  }
  0x16   : > { %s794_s15 = sshll.u32 (!%p256_p9), %s889_s14, 4  ;;  %s795_s15 = int_to_ptr.vmem [resolvable:$false] %s794_s15 }
  0x17   : > { %s796_s16 = scalar_lea.vmem (!%p256_p9), %s795_s15, 32 }
  0x18   : > { %734 = vmatpush3.bf16.msra.mxu0 (!%p256_p9), %v733_v7 }
  0x19   : > { %s294_s22 = scalar_select %p293_p10, %s955_s5, 1  ;;  %v390_v16 = vstv %s389_s19 }
  0x1b   : > { %s687_s23 = sshll.u32 %s294_s22, 3  ;;  %s695_s22 = sshll.u32 %s955_s5, 4 }
  0x1c   : > { %s296_s30 = scalar_lea.vmem %s1090_s0, %s687_s23  ;;  %s300_s18 = scalar_lea.vmem %s1091_s1, %s687_s23 }
  0x1d   : > { %v301_v8 = vld [vmem:[%s296_s30] sm:$0xff]  ;;  %s1021_s25 = scalar_lea.hbm %s1097_s7, %s695_s22  ;;  %s588_s30 = sshll.u32 %s292_s21, 4  ;;  %s589_s30 = int_to_ptr.vmem [resolvable:$true] %s588_s30 }
  0x1e   : > { %717 = vmatmul.mubr.msk.f32.vlgmr.msra.gmra.mrb[0].mxu0 %vm313_vm1, %v301_v8  ;;  %v478_v15 = vld [vmem:[%s300_s18] sm:$0xff]  ;;  %s790_s10 = scalar_lea.vmem %s589_s30, 16  ;;  %p797_p0 = scmp.lt.s32.totalorder %s589_s30, %s795_s15 }
  0x1f   : > { %p791_p11 = scmp.ne.s32.totalorder %s589_s30, %s790_s10  ;;  %p798_p1 = scmp.lt.s32.totalorder %s796_s16, %s790_s10 }
  0x21   : > { %p792_p12 = pnand %p791_p11, %p972_p5  ;;  %p799_p2 = por %p798_p1, %p797_p0 }
  0x23   : > { %p793_p13 = pneg %p792_p12 }
  0x25   : > { %p800_p3 = pnand %p799_p2, %p793_p13 }
  0xf1   : > { %v383_v10 = vpop.f32.mrb[0].mxu0 }
  0xf2   : > { %v384_v11 = vadd.f32 %v689_v9, %v383_v10  ;;  %v718_v12 = vpop.f32.mrb[1].mxu0 }
  0xf4   : > { %782 = vtanh.f32 %v384_v11 }
  0xfe   : > { %v783_v13 = vpop.eup %782 }
  0xff   : > { %720 = vmatpush3.xpose.msk.msra.mxu1 %vm391_vm2, %v783_v13 }
 0x100   : > { %724 = vmatprep.subr.mxu1 %v888_v6 }
 0x102   : > { %722 = vmatmul.mubr.msk.f32.vlgmr.msra.gmra.mrb[0].mxu1 %vm391_vm2, %v388_v14 }
 0x103   : > { %726 = vmatprep.mubr.msk.f32.mxu1 %vm887_vm0, %v888_v6  ;;  %725 = vmatpush3.msra.mxu1 %v478_v15 }
 0x1d5   : > { %v464_v17 = vpop.f32.mrb[0].mxu1 }
 0x1d6   : > { %v465_v18 = vadd.f32 %v464_v17, %v390_v16  ;;  %v723_v19 = vpop.f32.mrb[1].mxu1 }
 0x1d8   : > { %v693_v20 = vmul.f32 -1.442695, %v465_v18 }
 0x1da   : > { %784 = vpow2.f32 %v693_v20 }
 0x1e4   : > { %v785_v21 = vpop.eup %784 }
 0x1e5   : > { %v471_v22 = vadd.f32 1.0, %v785_v21 }
 0x1e7   : > { %786 = vrcp.f32 %v471_v22 }
 0x1f1   : > { %v787_v23 = vpop.eup %786 }
 0x1f2   : > { %727 = vmatmul.mubr.msk.f32.vlgmr.msra.gmra.mrb[2].mxu1 %vm479_vm3, %v787_v23  ;;  %v475_v24 = vsel %vm474_vm4, %v787_v23, 0.0  ;;  %557 = vst.msk [vmem:[%s292_s21] sm:$0x1] %vm474_vm4, %v787_v23 }
 0x1f3   : > { %476 = vadd.xlane.f32.xlu0 %v475_v24 }
 0x1f4   : > { %803 = shalt.err (!%p800_p3)
}
 0x1f5   : > { %s804_s17 = scalar_lea.hbm %s1021_s25, 16  ;;  %s808_s21 = scalar_lea.hbm %s1097_s7, 32 }
 0x1f6   : > { %p805_p4 = scmp.ne.s32.totalorder %s1021_s25, %s804_s17  ;;  %p809_p9 = scmp.lt.u32.totalorder %s1021_s25, %s1097_s7 }
 0x1f7   : > { %p810_p10 = scmp.lt.u32.totalorder %s808_s21, %s804_s17  ;;  %p812_p12 = scmp.lt.u32.totalorder %s804_s17, %s1021_s25 }
 0x1f8   : > { %p806_p7 = pnand %p805_p4, %p972_p5 }
 0x1f9   : > { %p811_p11 = por %p810_p10, %p809_p9 }
 0x1fa   : > { %p807_p8 = pneg %p806_p7 }
 0x1fb   : > { %p813_p13 = por %p812_p12, %p811_p11 }
 0x1fd   : > { %p814_p0 = pnand %p813_p13, %p807_p8 }
 0x1ff   : > { %817 = shalt.err (!%p814_p0)
}
 0x200   : > { %736 = dma.vmem_to_hbm [thread:$0]  (%p972_p5), %s589_s30, 16, %s1021_s25, %s563_s9   ;;  %vm555_vm5 = vcmask 253952  }
 0x201   : > { %s286_s10 = scalar_lea.vmem [#allocation3], %s1012_s20  ;;  %s1047_s17 = scalar_lea.hbm %s1096_s6, %s695_s22 }
 0x202   : > { %s575_s14 = sshll.u32 %s286_s10, 4  ;;  %s559_s25 = scalar_lea.sflag [#allocation4], %s1012_s20  ;;  %s1049_s14 = int_to_ptr.vmem [resolvable:$true] %s575_s14 }
 0x203   : > { %s818_s30 = scalar_lea.vmem %s1049_s14, 16  ;;  %s890_s9 = smov [#allocation3]  }
 0x204   : > { %p819_p1 = scmp.ne.s32.totalorder %s1049_s14, %s818_s30  ;;  %s822_s18 = sshll.u32 %s890_s9, 4  ;;  %s823_s18 = int_to_ptr.vmem [resolvable:$false] %s822_s18 }
 0x205   : > { %s824_s5 = scalar_lea.vmem %s823_s18, 32  ;;  %p825_p4 = scmp.lt.s32.totalorder %s1049_s14, %s823_s18 }
 0x206   : > { %p820_p2 = pnand %p819_p1, %p972_p5  ;;  %p826_p7 = scmp.lt.s32.totalorder %s824_s5, %s818_s30 }
 0x208   : > { %p821_p3 = pneg %p820_p2  ;;  %p827_p8 = por %p826_p7, %p825_p4 }
 0x20a   : > { %p828_p9 = pnand %p827_p8, %p821_p3 }
 0x280   : > { %v477_v25 = vpop.xlane.xlu0 %476 }
 0x281   : > { %788 = vrcp.f32 %v477_v25 }
 0x28b   : > { %v789_v26 = vpop.eup %788 }
 0x2c5   : > { %v549_v27 = vpop.f32.mrb[2].mxu1 }
 0x2c6   : > { %v554_v28 = vmul.f32 %v789_v26, %v549_v27  ;;  %v728_v29 = vpop.f32.mrb[3].mxu1 }
 0x2c8   : > { %556 = vst.msk [vmem:[%s286_s10] sm:$0x1] %vm555_vm5, %v554_v28 }
 0x2c9   : > { %831 = shalt.err (!%p828_p9)
}
 0x2ca   : > { %s832_s20 = scalar_lea.hbm %s1047_s17, 16  ;;  %s836_s21 = scalar_lea.hbm %s1096_s6, 32 }
 0x2cb   : > { %p833_p10 = scmp.ne.s32.totalorder %s1047_s17, %s832_s20  ;;  %p837_p13 = scmp.lt.u32.totalorder %s1047_s17, %s1096_s6 }
 0x2cc   : > { %p838_p0 = scmp.lt.u32.totalorder %s836_s21, %s832_s20  ;;  %p840_p2 = scmp.lt.u32.totalorder %s832_s20, %s1047_s17 }
 0x2cd   : > { %p834_p11 = pnand %p833_p10, %p972_p5 }
 0x2ce   : > { %p839_p1 = por %p838_p0, %p837_p13 }
 0x2cf   : > { %p835_p12 = pneg %p834_p11 }
 0x2d0   : > { %p841_p3 = por %p840_p2, %p839_p1 }
 0x2d2   : > { %p842_p4 = pnand %p841_p3, %p835_p12 }
 0x2d4   : > { %845 = shalt.err (!%p842_p4)
}
 0x2d5   : > { %735 = dma.vmem_to_hbm [thread:$0]  (%p972_p5), %s1049_s14, 16, %s1047_s17, %s559_s25  }
 0x2d6 PF: > { %p746_p7 = scmp.ge.s32.totalorder %s884_s29, 2  ;;  %s600_s10 = sand.u32 1, %s872_s26  }
 0x2d7   : > { %s601_s15 = scalar_lea.sflag [#allocation4], %s600_s10 }
 0x2d8   : > { %p740_p8 = pnand %p746_p7, %p976_p6 }
 0x2da   : > { %863 = dma.done.wait (!%p740_p8), %s601_s15, 16  }
 0x2db   : > { %865 = vsyncadd (!%p740_p8), %s601_s15, 4294967280  ;;  %s609_s16 = scalar_lea.sflag [#allocation6], %s600_s10 }
 0x2dc   : > { %867 = dma.done.wait (!%p740_p8), %s609_s16, 16  }
 0x2dd   : > { %869 = vsyncadd (!%p740_p8), %s609_s16, 4294967280  ;;  %p22_p5 = scmp.ge.s32.totalorder %s959_s8, 4   ;;  %s1100_s26 = smov %s876_s27 }
 0x2de   : > { %s1101_s27 = smov %s880_s28  ;;  %s1102_s28 = smov %s970_s11 }
 0x2df   : > { %s1103_s29 = smov %s959_s8  ;;  %24 = sbr.rel (!%p22_p5) target bundleno = 7 (0x7), region = 99 }
 0x2e6   :  { %613 = vsyncpa [#allocation4], 1 }
 0x2e7   :  { %615 = vsyncpa [#allocation4 + $0x1], 1 }
 0x2e8   :  { %616 = vsyncpa [#allocation6], 1 }
 0x2e9   :  { %618 = vsyncpa [#allocation6 + $0x1], 1 }

</bundles_post_ra>
